<compile_context>
chip_gen: v7x
topology: tpu7x:2x2x1
jax: 0.10.0
libtpu: 0.0.40
codegen_flags: <defaults>
</compile_context>

<pallas_src>
import functools
import math

import jax
import jax.numpy as jnp
import numpy as np
from jax import lax
from jax.experimental import pallas as pl
from jax.experimental.pallas import tpu as pltpu


def _round_up(x, m):
    return ((x + m - 1) // m) * m


def _clam_sb_kernel(D, TN, n_valid, has_pad,
                    x_ref, w0_ref, b0_ref, wab_ref, bab_ref,
                    wct_ref, bc_ref, wcls_ref, bcls_ref,
                    logits_ref, araw_ref,
                    m_sc, l_sc, acc_sc):
    i = pl.program_id(0)

    # --- init online-softmax accumulators on the first N tile ---------------
    @pl.when(i == 0)
    def _():
        m_sc[...] = jnp.full_like(m_sc, -jnp.inf)
        l_sc[...] = jnp.zeros_like(l_sc)
        acc_sc[...] = jnp.zeros_like(acc_sc)

    # --- fc: Linear(F->H) + ReLU (bf16 MXU inputs, f32 accumulate) ----------
    x = x_ref[...]                                                   # (TN, F) bf16
    hh = jnp.dot(x, w0_ref[...], preferred_element_type=jnp.float32) + b0_ref[...]
    hh = jnp.maximum(hh, 0.0)                                        # (TN, H) f32
    hh_bf = hh.astype(jnp.bfloat16)

    # --- Attn_Net_Gated with fused [Wa | Wb]: one MXU matmul ----------------
    ab = jnp.dot(hh_bf, wab_ref[...], preferred_element_type=jnp.float32) + bab_ref[...]
    a = jnp.tanh(ab[:, :D])                                          # (TN, D) f32
    b = jax.nn.sigmoid(ab[:, D:])                                    # (TN, D) f32
    g = (a * b).astype(jnp.bfloat16)                                 # (TN, D)

    # --- attention logits, computed directly lane-dense as (1, TN) ----------
    # s = wc^T contracted with (a*b) over D  ==  ((a*b) @ wc)^T, no transpose.
    s = lax.dot_general(wct_ref[...], g,
                        dimension_numbers=(((1,), (1,)), ((), ())),
                        preferred_element_type=jnp.float32) + bc_ref[...]    # (1, TN)

    # raw (pre-softmax) attention map for this tile -> unmasked lane-dense store
    araw_ref[...] = s

    # --- online softmax over instances + weighted accumulation of hh --------
    if has_pad:   # static: only emit the mask ops when padding actually exists
        lane = lax.broadcasted_iota(jnp.int32, s.shape, 1) + i * TN
        s_m = jnp.where(lane < n_valid, s, -jnp.inf)                 # mask padding
    else:
        s_m = s

    m_prev = m_sc[...]                                               # (1, 1)
    m_new = jnp.maximum(m_prev, jnp.max(s_m, axis=1, keepdims=True))
    alpha = jnp.exp(m_prev - m_new)                                  # (1, 1)
    p = jnp.exp(s_m - m_new)                                         # (1, TN)
    l_sc[...] = alpha * l_sc[...] + jnp.sum(p, axis=1, keepdims=True)
    acc_sc[...] = alpha * acc_sc[...] + jnp.dot(
        p.astype(jnp.bfloat16), hh_bf, preferred_element_type=jnp.float32)
    m_sc[...] = m_new

    # --- finalize: M = softmax(A) @ hh, logits = M @ Wcls + bcls -------------
    @pl.when(i == pl.num_programs(0) - 1)
    def _():
        M = acc_sc[...] / l_sc[...]                                  # (1, H), exact
        logits_ref[...] = jnp.dot(M.astype(jnp.bfloat16), wcls_ref[...],
                                  preferred_element_type=jnp.float32) + bcls_ref[...]


def clam_sb_forward(h, params, *, max_tile=1024):
    """CLAM_SB inference forward.

    h: (N, F) or with extra leading dims (e.g. (1, N, F)); flattened to (N, F)
    (safe even for N == 1, unlike torch.squeeze on all dims).
    Returns (logits (1, n_classes), A_raw (1, N))."""
    F = h.shape[-1]
    x = jnp.asarray(h, jnp.float32).reshape(-1, F)
    N = x.shape[0]

    H = params["w0"].shape[1]
    D = params["wa"].shape[1]
    C = params["wcls"].shape[1]

    # N tile: multiple of 128 (lane-dense A_raw stores), capped by max_tile.
    TN = min(max_tile, _round_up(N, 128))
    N_pad = _round_up(N, TN)
    has_pad = N_pad != N
    if has_pad:
        x = jnp.pad(x, ((0, N_pad - N), (0, 0)))
    n_tiles = N_pad // TN

    bf = jnp.bfloat16
    x_bf = x.astype(bf)
    w0 = params["w0"].astype(bf)                                      # (F, H)
    b0 = params["b0"]                                                 # (1, H) f32
    wab = jnp.concatenate([params["wa"], params["wb"]], axis=1).astype(bf)  # (H, 2D)
    bab = jnp.concatenate([params["ba"], params["bb"]], axis=1)             # (1, 2D)
    wct = params["wc"].T.astype(bf)                                   # (1, D)
    bc = params["bc"].reshape(1, 1)                                   # (1, 1)
    wcls = params["wcls"].astype(bf)                                  # (H, C)
    bcls = params["bcls"]                                             # (1, C)

    const = lambda shape: pl.BlockSpec(shape, lambda i: (0, 0))

    flops = 2 * N_pad * (F * H + H * 2 * D + D + H) + 2 * H * C
    transcendentals = N_pad * (2 * D + 1)
    bytes_accessed = (x_bf.size * 2 + w0.size * 2 + wab.size * 2 + wct.size * 2
                      + wcls.size * 2
                      + (b0.size + bab.size + bc.size + bcls.size) * 4
                      + N_pad * 4 + C * 4)

    logits, araw = pl.pallas_call(
        functools.partial(_clam_sb_kernel, D, TN, N, has_pad),
        grid=(n_tiles,),
        in_specs=[
            pl.BlockSpec((TN, F), lambda i: (i, 0)),   # x: streamed per N tile
            const((F, H)), const((1, H)),              # w0, b0 (VMEM-resident)
            const((H, 2 * D)), const((1, 2 * D)),      # fused wa|wb, ba|bb
            const((1, D)), const((1, 1)),              # wc^T, bc
            const((H, C)), const((1, C)),              # classifier
        ],
        out_specs=[
            pl.BlockSpec((1, C), lambda i: (0, 0)),    # logits (written last tile)
            pl.BlockSpec((1, TN), lambda i: (0, i)),   # A_raw, lane-dense per tile
        ],
        out_shape=[
            jax.ShapeDtypeStruct((1, C), jnp.float32),
            jax.ShapeDtypeStruct((1, N_pad), jnp.float32),
        ],
        scratch_shapes=[
            pltpu.VMEM((1, 1), jnp.float32),           # running max m
            pltpu.VMEM((1, 1), jnp.float32),           # running sum l
            pltpu.VMEM((1, H), jnp.float32),           # running acc = sum p_i*hh_i
        ],
        compiler_params=pltpu.CompilerParams(
            dimension_semantics=("arbitrary",),        # N axis is a reduction
            vmem_limit_bytes=48 * 1024 * 1024),
        cost_estimate=pl.CostEstimate(
            flops=flops, transcendentals=transcendentals,
            bytes_accessed=bytes_accessed),
    )(x_bf, w0, b0, wab, bab, wct, bc, wcls, bcls)

    return logits, araw[:, :N]


def _xavier_normal(key, fan_in, fan_out):
    # torch.nn.init.xavier_normal_: std = sqrt(2 / (fan_in + fan_out))
    std = math.sqrt(2.0 / (fan_in + fan_out))
    return jax.random.normal(key, (fan_in, fan_out), dtype=jnp.float32) * std


def init_clam_sb_params(key, in_dim, hid, attn_dim, n_classes):
    """Parameter init matching CLAM_SB shapes; weights stored transposed
    (in, out), biases zero (as in initialize_weights)."""
    ks = jax.random.split(key, 5)
    return {
        # fc: Linear(in_dim, hid)
        "w0": _xavier_normal(ks[0], in_dim, hid),
        "b0": jnp.zeros((1, hid), jnp.float32),
        # Attn_Net_Gated: attention_a / attention_b: Linear(hid, attn_dim)
        "wa": _xavier_normal(ks[1], hid, attn_dim),
        "ba": jnp.zeros((1, attn_dim), jnp.float32),
        "wb": _xavier_normal(ks[2], hid, attn_dim),
        "bb": jnp.zeros((1, attn_dim), jnp.float32),
        # attention_c: Linear(attn_dim, 1)   (single-branch SB)
        "wc": _xavier_normal(ks[3], attn_dim, 1),
        "bc": jnp.zeros((1, 1), jnp.float32),
        # classifiers: Linear(hid, n_classes)
        "wcls": _xavier_normal(ks[4], hid, n_classes),
        "bcls": jnp.zeros((1, n_classes), jnp.float32),
    }


def clam_sb_reference(h, p):
    """Plain-JAX f32 reference matching the PyTorch forward."""
    x = jnp.asarray(h, jnp.float32).reshape(-1, h.shape[-1])
    hh = jnp.maximum(x @ p["w0"] + p["b0"], 0.0)
    a = jnp.tanh(hh @ p["wa"] + p["ba"])
    b = jax.nn.sigmoid(hh @ p["wb"] + p["bb"])
    A = (a * b) @ p["wc"] + p["bc"]          # (N, 1)
    A_raw = A.T                              # (1, N)
    Asm = jax.nn.softmax(A_raw, axis=1)
    M = Asm @ hh                             # (1, H)
    logits = M @ p["wcls"] + p["bcls"]       # (1, C)
    return logits, A_raw


if __name__ == "__main__":
    # Small shapes consistent with the module structure:
    #   N instances, in_dim -> hid -> attn_dim, n_classes output logits.
    IN_DIM, HID, ATTN_DIM, N_CLASSES = 64, 32, 16, 2

    key = jax.random.PRNGKey(0)
    k1, k2, kp = jax.random.split(key, 3)
    params = init_clam_sb_params(kp, IN_DIM, HID, ATTN_DIM, N_CLASSES)

    # Tolerances account for bf16 MXU inputs vs the f32 reference.
    ATOL = RTOL = 5e-2

    # Case 1: bag with leading singleton dim (like the torch module input);
    # single N tile, exercises the tile-aligned-with-padding path.
    N1 = 16
    x1 = jax.random.normal(k1, (1, N1, IN_DIM), dtype=jnp.float32)
    logits1, araw1 = clam_sb_forward(x1, params)
    jax.block_until_ready((logits1, araw1))
    ref_l1, ref_a1 = clam_sb_reference(x1, params)
    assert logits1.shape == (1, N_CLASSES) and araw1.shape == (1, N1)
    assert np.allclose(np.asarray(logits1), np.asarray(ref_l1), atol=ATOL, rtol=RTOL)
    assert np.allclose(np.asarray(araw1), np.asarray(ref_a1), atol=ATOL, rtol=RTOL)

    # Case 2: larger bag with a ragged tail -> exercises the multi-tile
    # online-softmax accumulation and padded-lane masking (max_tile=128
    # forces 3 N tiles at N=300).
    N2 = 300
    x2 = jax.random.normal(k2, (N2, IN_DIM), dtype=jnp.float32)
    logits2, araw2 = clam_sb_forward(x2, params, max_tile=128)
    jax.block_until_ready((logits2, araw2))
    ref_l2, ref_a2 = clam_sb_reference(x2, params)
    assert logits2.shape == (1, N_CLASSES) and araw2.shape == (1, N2)
    assert np.allclose(np.asarray(logits2), np.asarray(ref_l2), atol=ATOL, rtol=RTOL)
    assert np.allclose(np.asarray(araw2), np.asarray(ref_a2), atol=ATOL, rtol=RTOL)

    print("KERNEL_OK")
</pallas_src>

<mosaic_0001>
module attributes {stable_mosaic.version = 11 : i64} {
  func.func @_clam_sb_kernel(%arg0: i32, %arg1: memref<128x64xbf16, #tpu.memory_space<vmem>>, %arg2: memref<64x32xbf16, #tpu.memory_space<vmem>>, %arg3: memref<1x32xf32, #tpu.memory_space<vmem>>, %arg4: memref<32x32xbf16, #tpu.memory_space<vmem>>, %arg5: memref<1x32xf32, #tpu.memory_space<vmem>>, %arg6: memref<1x16xbf16, #tpu.memory_space<vmem>>, %arg7: memref<1x1xf32, #tpu.memory_space<vmem>>, %arg8: memref<32x2xbf16, #tpu.memory_space<vmem>>, %arg9: memref<1x2xf32, #tpu.memory_space<vmem>>, %arg10: memref<1x2xf32, #tpu.memory_space<vmem>>, %arg11: memref<1x128xf32, #tpu.memory_space<vmem>>, %arg12: memref<1x1xf32, #tpu.memory_space<vmem>>, %arg13: memref<1x1xf32, #tpu.memory_space<vmem>>, %arg14: memref<1x32xf32, #tpu.memory_space<vmem>>) attributes {dimension_semantics = [#tpu.dimension_semantics<arbitrary>], iteration_bounds = array<i64: 1>, scalar_prefetch = 0 : i64, scratch_operands = 3 : i64, tpu.core_type = #tpu.core_type<tc>, window_params = [{transform_indices = @transform_0, window_bounds = array<i64: 128, 64>}, {pipeline_mode = #tpu.pipeline_mode<synchronous>, transform_indices = @transform_1, window_bounds = array<i64: 64, 32>}, {pipeline_mode = #tpu.pipeline_mode<synchronous>, transform_indices = @transform_2, window_bounds = array<i64: 1, 32>}, {pipeline_mode = #tpu.pipeline_mode<synchronous>, transform_indices = @transform_3, window_bounds = array<i64: 32, 32>}, {pipeline_mode = #tpu.pipeline_mode<synchronous>, transform_indices = @transform_4, window_bounds = array<i64: 1, 32>}, {pipeline_mode = #tpu.pipeline_mode<synchronous>, transform_indices = @transform_5, window_bounds = array<i64: 1, 16>}, {pipeline_mode = #tpu.pipeline_mode<synchronous>, transform_indices = @transform_6, window_bounds = array<i64: 1, 1>}, {pipeline_mode = #tpu.pipeline_mode<synchronous>, transform_indices = @transform_7, window_bounds = array<i64: 32, 2>}, {pipeline_mode = #tpu.pipeline_mode<synchronous>, transform_indices = @transform_8, window_bounds = array<i64: 1, 2>}, {pipeline_mode = #tpu.pipeline_mode<synchronous>, transform_indices = @transform_9, window_bounds = array<i64: 1, 2>}, {transform_indices = @transform_10, window_bounds = array<i64: 1, 128>}]} {
    %c0_i32 = arith.constant 0 : i32
    %0 = arith.cmpi eq, %arg0, %c0_i32 : i32
    %1 = arith.extui %0 : i1 to i32
    %c0_i32_0 = arith.constant 0 : i32
    %2 = arith.cmpi ne, %1, %c0_i32_0 : i32
    scf.if %2 {
      %cst_38 = arith.constant 0xFF800000 : f32
      %67 = vector.broadcast %cst_38 : f32 to vector<1x1xf32>
      %c0_39 = arith.constant 0 : index
      %c0_40 = arith.constant 0 : index
      %68 = vector.load %arg12[%c0_39, %c0_40] : memref<1x1xf32, #tpu.memory_space<vmem>>, vector<1x1xf32>
      tpu.vector_store %arg12[%c0_39, %c0_40], %67 {strides = array<i32>} : memref<1x1xf32, #tpu.memory_space<vmem>>, vector<1x1xf32>,
      %cst_41 = arith.constant 0.000000e+00 : f32
      %69 = vector.broadcast %cst_41 : f32 to vector<1x1xf32>
      %c0_42 = arith.constant 0 : index
      %c0_43 = arith.constant 0 : index
      %70 = vector.load %arg13[%c0_42, %c0_43] : memref<1x1xf32, #tpu.memory_space<vmem>>, vector<1x1xf32>
      tpu.vector_store %arg13[%c0_42, %c0_43], %69 {strides = array<i32>} : memref<1x1xf32, #tpu.memory_space<vmem>>, vector<1x1xf32>,
      %cst_44 = arith.constant 0.000000e+00 : f32
      %71 = vector.broadcast %cst_44 : f32 to vector<1x32xf32>
      %c0_45 = arith.constant 0 : index
      %c0_46 = arith.constant 0 : index
      %72 = vector.load %arg14[%c0_45, %c0_46] : memref<1x32xf32, #tpu.memory_space<vmem>>, vector<1x32xf32>
      tpu.vector_store %arg14[%c0_45, %c0_46], %71 {strides = array<i32>} : memref<1x32xf32, #tpu.memory_space<vmem>>, vector<1x32xf32>,
    } else {
    }
    %c0 = arith.constant 0 : index
    %c0_1 = arith.constant 0 : index
    %3 = vector.load %arg1[%c0, %c0_1] : memref<128x64xbf16, #tpu.memory_space<vmem>>, vector<128x64xbf16>
    %c0_2 = arith.constant 0 : index
    %c0_3 = arith.constant 0 : index
    %4 = vector.load %arg2[%c0_2, %c0_3] : memref<64x32xbf16, #tpu.memory_space<vmem>>, vector<64x32xbf16>
    %cst = arith.constant dense<0.000000e+00> : vector<128x32xf32>
    %5 = tpu.matmul %3, %4, %cst {dimension_numbers = #tpu.dot_dimension_numbers<[1], [0], [0], [1], [0, 0, 1, 1], [], []>} : vector<128x64xbf16>, vector<64x32xbf16>, vector<128x32xf32> -> vector<128x32xf32>
    %c0_4 = arith.constant 0 : index
    %c0_5 = arith.constant 0 : index
    %6 = vector.load %arg3[%c0_4, %c0_5] : memref<1x32xf32, #tpu.memory_space<vmem>>, vector<1x32xf32>
    %7 = vector.broadcast %6 : vector<1x32xf32> to vector<128x32xf32>
    %8 = arith.addf %5, %7 : vector<128x32xf32>
    %cst_6 = arith.constant 0.000000e+00 : f32
    %9 = vector.broadcast %cst_6 : f32 to vector<128x32xf32>
    %10 = arith.maximumf %8, %9 : vector<128x32xf32>
    %11 = arith.truncf %10 : vector<128x32xf32> to vector<128x32xbf16>
    %c0_7 = arith.constant 0 : index
    %c0_8 = arith.constant 0 : index
    %12 = vector.load %arg4[%c0_7, %c0_8] : memref<32x32xbf16, #tpu.memory_space<vmem>>, vector<32x32xbf16>
    %cst_9 = arith.constant dense<0.000000e+00> : vector<128x32xf32>
    %13 = tpu.matmul %11, %12, %cst_9 {dimension_numbers = #tpu.dot_dimension_numbers<[1], [0], [0], [1], [0, 0, 1, 1], [], []>} : vector<128x32xbf16>, vector<32x32xbf16>, vector<128x32xf32> -> vector<128x32xf32>
    %c0_10 = arith.constant 0 : index
    %c0_11 = arith.constant 0 : index
    %14 = vector.load %arg5[%c0_10, %c0_11] : memref<1x32xf32, #tpu.memory_space<vmem>>, vector<1x32xf32>
    %15 = vector.broadcast %14 : vector<1x32xf32> to vector<128x32xf32>
    %16 = arith.addf %13, %15 : vector<128x32xf32>
    %17 = vector.extract_strided_slice %16 {offsets = [0, 0], sizes = [128, 16], strides = [1, 1]} : vector<128x32xf32> to vector<128x16xf32>
    %18 = math.tanh %17 : vector<128x16xf32>
    %19 = vector.extract_strided_slice %16 {offsets = [0, 16], sizes = [128, 16], strides = [1, 1]} : vector<128x32xf32> to vector<128x16xf32>
    %20 = arith.negf %19 : vector<128x16xf32>
    %21 = math.exp %20 : vector<128x16xf32>
    %cst_12 = arith.constant 1.000000e+00 : f32
    %22 = vector.broadcast %cst_12 : f32 to vector<128x16xf32>
    %23 = arith.addf %22, %21 : vector<128x16xf32>
    %24 = arith.divf %22, %23 : vector<128x16xf32>
    %25 = arith.mulf %18, %24 : vector<128x16xf32>
    %26 = arith.truncf %25 : vector<128x16xf32> to vector<128x16xbf16>
    %c0_13 = arith.constant 0 : index
    %c0_14 = arith.constant 0 : index
    %27 = vector.load %arg6[%c0_13, %c0_14] : memref<1x16xbf16, #tpu.memory_space<vmem>>, vector<1x16xbf16>
    %cst_15 = arith.constant dense<0.000000e+00> : vector<1x128xf32>
    %28 = tpu.matmul %27, %26, %cst_15 {dimension_numbers = #tpu.dot_dimension_numbers<[1], [1], [0], [0], [0, 0, 1, 0], [], []>} : vector<1x16xbf16>, vector<128x16xbf16>, vector<1x128xf32> -> vector<1x128xf32>
    %c0_16 = arith.constant 0 : index
    %c0_17 = arith.constant 0 : index
    %29 = vector.load %arg7[%c0_16, %c0_17] : memref<1x1xf32, #tpu.memory_space<vmem>>, vector<1x1xf32>
    %30 = vector.broadcast %29 : vector<1x1xf32> to vector<1x128xf32>
    %31 = arith.addf %28, %30 : vector<1x128xf32>
    %c0_18 = arith.constant 0 : index
    %c0_19 = arith.constant 0 : index
    %32 = vector.load %arg11[%c0_18, %c0_19] : memref<1x128xf32, #tpu.memory_space<vmem>>, vector<1x128xf32>
    tpu.vector_store %arg11[%c0_18, %c0_19], %31 {strides = array<i32>} : memref<1x128xf32, #tpu.memory_space<vmem>>, vector<1x128xf32>,
    %33 = tpu.iota {dimensions = array<i32: 1>} : vector<1x128xi32>
    %c128_i32 = arith.constant 128 : i32
    %34 = arith.muli %arg0, %c128_i32 : i32
    %35 = vector.broadcast %34 : i32 to vector<1x128xi32>
    %36 = arith.addi %33, %35 : vector<1x128xi32>
    %c16_i32 = arith.constant 16 : i32
    %37 = vector.broadcast %c16_i32 : i32 to vector<1x128xi32>
    %38 = arith.cmpi slt, %36, %37 : vector<1x128xi32>
    %cst_20 = arith.constant 0xFF800000 : f32
    %39 = vector.broadcast %cst_20 : f32 to vector<1x128xf32>
    %40 = arith.select %38, %31, %39 : vector<1x128xi1>, vector<1x128xf32>
    %c0_21 = arith.constant 0 : index
    %c0_22 = arith.constant 0 : index
    %41 = vector.load %arg12[%c0_21, %c0_22] : memref<1x1xf32, #tpu.memory_space<vmem>>, vector<1x1xf32>
    %cst_23 = arith.constant dense<0xFF800000> : vector<1xf32>
    %42 = vector.multi_reduction <maximumf>, %40, %cst_23 [1] : vector<1x128xf32> to vector<1xf32>
    %43 = vector.shape_cast %42 : vector<1xf32> to vector<1x1xf32>
    %44 = arith.maximumf %41, %43 : vector<1x1xf32>
    %45 = arith.subf %41, %44 : vector<1x1xf32>
    %46 = math.exp %45 : vector<1x1xf32>
    %47 = vector.broadcast %44 : vector<1x1xf32> to vector<1x128xf32>
    %48 = arith.subf %40, %47 : vector<1x128xf32>
    %49 = math.exp %48 : vector<1x128xf32>
    %c0_24 = arith.constant 0 : index
    %c0_25 = arith.constant 0 : index
    %50 = vector.load %arg13[%c0_24, %c0_25] : memref<1x1xf32, #tpu.memory_space<vmem>>, vector<1x1xf32>
    %51 = arith.mulf %46, %50 : vector<1x1xf32>
    %cst_26 = arith.constant dense<0.000000e+00> : vector<1xf32>
    %52 = vector.multi_reduction <add>, %49, %cst_26 [1] : vector<1x128xf32> to vector<1xf32>
    %53 = vector.shape_cast %52 : vector<1xf32> to vector<1x1xf32>
    %54 = arith.addf %51, %53 : vector<1x1xf32>
    %c0_27 = arith.constant 0 : index
    %c0_28 = arith.constant 0 : index
    %55 = vector.load %arg13[%c0_27, %c0_28] : memref<1x1xf32, #tpu.memory_space<vmem>>, vector<1x1xf32>
    tpu.vector_store %arg13[%c0_27, %c0_28], %54 {strides = array<i32>} : memref<1x1xf32, #tpu.memory_space<vmem>>, vector<1x1xf32>,
    %c0_29 = arith.constant 0 : index
    %c0_30 = arith.constant 0 : index
    %56 = vector.load %arg14[%c0_29, %c0_30] : memref<1x32xf32, #tpu.memory_space<vmem>>, vector<1x32xf32>
    %57 = vector.broadcast %46 : vector<1x1xf32> to vector<1x32xf32>
    %58 = arith.mulf %57, %56 : vector<1x32xf32>
    %59 = arith.truncf %49 : vector<1x128xf32> to vector<1x128xbf16>
    %cst_31 = arith.constant dense<0.000000e+00> : vector<1x32xf32>
    %60 = tpu.matmul %59, %11, %cst_31 {dimension_numbers = #tpu.dot_dimension_numbers<[1], [0], [0], [1], [0, 0, 1, 1], [], []>} : vector<1x128xbf16>, vector<128x32xbf16>, vector<1x32xf32> -> vector<1x32xf32>
    %61 = arith.addf %58, %60 : vector<1x32xf32>
    %c0_32 = arith.constant 0 : index
    %c0_33 = arith.constant 0 : index
    %62 = vector.load %arg14[%c0_32, %c0_33] : memref<1x32xf32, #tpu.memory_space<vmem>>, vector<1x32xf32>
    tpu.vector_store %arg14[%c0_32, %c0_33], %61 {strides = array<i32>} : memref<1x32xf32, #tpu.memory_space<vmem>>, vector<1x32xf32>,
    %c0_34 = arith.constant 0 : index
    %c0_35 = arith.constant 0 : index
    %63 = vector.load %arg12[%c0_34, %c0_35] : memref<1x1xf32, #tpu.memory_space<vmem>>, vector<1x1xf32>
    tpu.vector_store %arg12[%c0_34, %c0_35], %44 {strides = array<i32>} : memref<1x1xf32, #tpu.memory_space<vmem>>, vector<1x1xf32>,
    %c0_i32_36 = arith.constant 0 : i32
    %64 = arith.cmpi eq, %arg0, %c0_i32_36 : i32
    %65 = arith.extui %64 : i1 to i32
    %c0_i32_37 = arith.constant 0 : i32
    %66 = arith.cmpi ne, %65, %c0_i32_37 : i32
    scf.if %66 {
      %c0_38 = arith.constant 0 : index
      %c0_39 = arith.constant 0 : index
      %67 = vector.load %arg14[%c0_38, %c0_39] : memref<1x32xf32, #tpu.memory_space<vmem>>, vector<1x32xf32>
      %c0_40 = arith.constant 0 : index
      %c0_41 = arith.constant 0 : index
      %68 = vector.load %arg13[%c0_40, %c0_41] : memref<1x1xf32, #tpu.memory_space<vmem>>, vector<1x1xf32>
      %69 = vector.broadcast %68 : vector<1x1xf32> to vector<1x32xf32>
      %70 = arith.divf %67, %69 : vector<1x32xf32>
      %71 = arith.truncf %70 : vector<1x32xf32> to vector<1x32xbf16>
      %c0_42 = arith.constant 0 : index
      %c0_43 = arith.constant 0 : index
      %72 = vector.load %arg8[%c0_42, %c0_43] : memref<32x2xbf16, #tpu.memory_space<vmem>>, vector<32x2xbf16>
      %cst_44 = arith.constant dense<0.000000e+00> : vector<1x2xf32>
      %73 = tpu.matmul %71, %72, %cst_44 {dimension_numbers = #tpu.dot_dimension_numbers<[1], [0], [0], [1], [0, 0, 1, 1], [], []>} : vector<1x32xbf16>, vector<32x2xbf16>, vector<1x2xf32> -> vector<1x2xf32>
      %c0_45 = arith.constant 0 : index
      %c0_46 = arith.constant 0 : index
      %74 = vector.load %arg9[%c0_45, %c0_46] : memref<1x2xf32, #tpu.memory_space<vmem>>, vector<1x2xf32>
      %75 = arith.addf %73, %74 : vector<1x2xf32>
      %c0_47 = arith.constant 0 : index
      %c0_48 = arith.constant 0 : index
      %76 = vector.load %arg10[%c0_47, %c0_48] : memref<1x2xf32, #tpu.memory_space<vmem>>, vector<1x2xf32>
      tpu.vector_store %arg10[%c0_47, %c0_48], %75 {strides = array<i32>} : memref<1x2xf32, #tpu.memory_space<vmem>>, vector<1x2xf32>,
    } else {
    }
    return
  }
  func.func @transform_0(%arg0: i32) -> (i32, i32) {
    %c0_i32 = arith.constant 0 : i32
    %c0_i32_0 = arith.constant 0 : i32
    return %arg0, %c0_i32 : i32, i32
  }
  func.func @transform_1(%arg0: i32) -> (i32, i32) {
    %c0_i32 = arith.constant 0 : i32
    %c0_i32_0 = arith.constant 0 : i32
    %c0_i32_1 = arith.constant 0 : i32
    return %c0_i32, %c0_i32_0 : i32, i32
  }
  func.func @transform_2(%arg0: i32) -> (i32, i32) {
    %c0_i32 = arith.constant 0 : i32
    %c0_i32_0 = arith.constant 0 : i32
    %c0_i32_1 = arith.constant 0 : i32
    return %c0_i32, %c0_i32_0 : i32, i32
  }
  func.func @transform_3(%arg0: i32) -> (i32, i32) {
    %c0_i32 = arith.constant 0 : i32
    %c0_i32_0 = arith.constant 0 : i32
    %c0_i32_1 = arith.constant 0 : i32
    return %c0_i32, %c0_i32_0 : i32, i32
  }
  func.func @transform_4(%arg0: i32) -> (i32, i32) {
    %c0_i32 = arith.constant 0 : i32
    %c0_i32_0 = arith.constant 0 : i32
    %c0_i32_1 = arith.constant 0 : i32
    return %c0_i32, %c0_i32_0 : i32, i32
  }
  func.func @transform_5(%arg0: i32) -> (i32, i32) {
    %c0_i32 = arith.constant 0 : i32
    %c0_i32_0 = arith.constant 0 : i32
    %c0_i32_1 = arith.constant 0 : i32
    return %c0_i32, %c0_i32_0 : i32, i32
  }
  func.func @transform_6(%arg0: i32) -> (i32, i32) {
    %c0_i32 = arith.constant 0 : i32
    %c0_i32_0 = arith.constant 0 : i32
    %c0_i32_1 = arith.constant 0 : i32
    return %c0_i32, %c0_i32_0 : i32, i32
  }
  func.func @transform_7(%arg0: i32) -> (i32, i32) {
    %c0_i32 = arith.constant 0 : i32
    %c0_i32_0 = arith.constant 0 : i32
    %c0_i32_1 = arith.constant 0 : i32
    return %c0_i32, %c0_i32_0 : i32, i32
  }
  func.func @transform_8(%arg0: i32) -> (i32, i32) {
    %c0_i32 = arith.constant 0 : i32
    %c0_i32_0 = arith.constant 0 : i32
    %c0_i32_1 = arith.constant 0 : i32
    return %c0_i32, %c0_i32_0 : i32, i32
  }
  func.func @transform_9(%arg0: i32) -> (i32, i32) {
    %c0_i32 = arith.constant 0 : i32
    %c0_i32_0 = arith.constant 0 : i32
    %c0_i32_1 = arith.constant 0 : i32
    return %c0_i32, %c0_i32_0 : i32, i32
  }
  func.func @transform_10(%arg0: i32) -> (i32, i32) {
    %c0_i32 = arith.constant 0 : i32
    %c0_i32_0 = arith.constant 0 : i32
    return %c0_i32, %arg0 : i32, i32
  }
}

</mosaic_0001>

<bundles_post_ra>
// kernel: tpu_custom_call.1
= control target key start
LH: loop header
LB: loop body
LE: loop exit
PB: predicated region body
PF: predicated region fallthrough
CT: control target
= control target key end

     0   :  { %s1606_s0 = inlined_call_operand.vmem [shape: bf16[128,64], index: 0, kind: input, shape index: {}]   ;;  %s1607_s1 = inlined_call_operand.vmem [shape: bf16[64,32], index: 1, kind: input, shape index: {}]   ;;  %s1608_s2 = inlined_call_operand.vmem [shape: f32[1,32], index: 2, kind: input, shape index: {}]   ;;  %s1609_s3 = inlined_call_operand.vmem [shape: bf16[32,32], index: 3, kind: input, shape index: {}]   ;;  %s1610_s4 = inlined_call_operand.vmem [shape: f32[1,32], index: 4, kind: input, shape index: {}]   ;;  %s1611_s5 = inlined_call_operand.vmem [shape: bf16[1,16], index: 5, kind: input, shape index: {}]   ;;  %s1612_s6 = inlined_call_operand.<no memory space> [shape: f32[1,1], index: 6, kind: input, shape index: {}]   ;;  %s1613_s7 = inlined_call_operand.vmem [shape: bf16[32,2], index: 7, kind: input, shape index: {}]   ;;  %s1614_s8 = inlined_call_operand.vmem [shape: f32[1,2], index: 8, kind: input, shape index: {}]   ;;  %s1615_s9 = inlined_call_operand.hbm [shape: f32[1,2], index: 9, kind: output, shape index: {0}]   ;;  %s1616_s10 = inlined_call_operand.hbm [shape: f32[1,128], index: 10, kind: output, shape index: {1}]  }
   0x1   :  { %v16_v0 = vstv %s1612_s6 }
   0x2   :  { %17 = vst [vmem:[#allocation5] sm:$0x1] %v16_v0 }
   0x3   :  { %18 = vsyncpa [#allocation7], 0  ;;  %v1109_v1 = vld [vmem:[%s1607_s1] sm:$0xff]   ;;  %v1110_v2 = vld [vmem:[%s1607_s1 + $0x8] sm:$0xff]   ;;  %vm143_vm0 = vcmask 523264  }
   0x4   :  { %1008 = vmatprep.subr.bf16.mxu0 %v1109_v1  ;;  %v1111_v3 = vld [vmem:[%s1607_s1 + $0x10] sm:$0xff]   ;;  %v1113_v4 = vld [vmem:[%s1606_s0] sm:$0xff]   ;;  %v1112_v5 = vld [vmem:[%s1607_s1 + $0x18] sm:$0xff]  }
   0x5   :  { %1009 = vmatpush3.bf16.msra.mxu0 %v1109_v1  ;;  %1016 = vmatprep.mubr.msk.bf16.mxu0 %vm143_vm0, %v1113_v4  ;;  %v1114_v6 = vld [vmem:[%s1606_s0 + $0x8] sm:$0xff]  }
   0x6   :  { %1010 = vmatprep.subr.bf16.mxu0 %v1110_v2 }
   0x9   :  { %1011 = vmatpush3.bf16.msra.mxu0 %v1110_v2 }
   0xa   :  { %1012 = vmatprep.subr.bf16.mxu0 %v1111_v3 }
   0xd   :  { %1013 = vmatpush3.bf16.msra.mxu0 %v1111_v3 }
   0xe   :  { %1014 = vmatprep.subr.bf16.mxu0 %v1112_v5 }
   0xf   :  { %19 = vsyncpa [#allocation9], 0  ;;  %v1115_v7 = vld [vmem:[%s1606_s0 + $0x10] sm:$0xff]   ;;  %v1116_v8 = vld [vmem:[%s1606_s0 + $0x18] sm:$0xff]   ;;  %v1275_v15 = vmov 0.0   ;;  %vm312_vm1 = vcmask 261120  }
  0x10   :  { %v1117_v9 = vld [vmem:[%s1606_s0 + $0x20] sm:$0xff]   ;;  %v1118_v10 = vld [vmem:[%s1606_s0 + $0x28] sm:$0xff]   ;;  %v1119_v11 = vld [vmem:[%s1606_s0 + $0x30] sm:$0xff]   ;;  %vm1277_vm2 = vmmov 0   ;;  %vm645_vm3 = vcmask 130048   ;;  %vm722_vm5 = vcmask 1040384  }
  0x11   :  { %1015 = vmatpush3.bf16.msra.mxu0 %v1112_v5  ;;  %v1120_v12 = vld [vmem:[%s1606_s0 + $0x38] sm:$0xff]   ;;  %v1121_v13 = vld [vmem:[%s1609_s3] sm:$0xff]   ;;  %v1122_v14 = vld [vmem:[%s1609_s3 + $0x8] sm:$0xff]   ;;  %vm43_vm6 = vcmask 0   ;;  %vm46_vm7 = vcmask 253952  }
  0x12   :  { %1032 = vmatprep.subr.bf16.mxu1 %v1121_v13  ;;  %1072 = vmatprep.subr.bf16.mxu0 %v1275_v15  ;;  %v1395_v16 = vld [vmem:[%s1608_s2] ss:$0 sm:$0xff]  ;;  %45 = vst.msk [vmem:[#allocation3] sm:$0x1] %vm43_vm6, %v1275_v15 }
  0x13   :  { %1033 = vmatpush3.bf16.msra.mxu1 %v1121_v13  ;;  %47 = vst.msk [vmem:[#allocation4] sm:$0x1] %vm46_vm7, %v1275_v15 }
  0x14   :  { %1017 = vmatmul.mubr.msk.bf16.vlgmr.msra.gmra.mrb[0].mxu0 %vm143_vm0, %v1114_v6  ;;  %1034 = vmatprep.subr.bf16.mxu1 %v1122_v14 }
  0x15   :  { %1020 = vmatprep.mubr.msk.bf16.mxu0 %vm143_vm0, %v1115_v7 }
  0x17   :  { %1035 = vmatpush3.bf16.msra.mxu1 %v1122_v14 }
  0x18   :  { %1052 = vmatprep.subr.bf16.mxu1 %v1275_v15 }
  0x1c   :  { %1021 = vmatmul.mubr.msk.bf16.gmra.mrb[4].mxu0 %vm143_vm0, %v1116_v8 }
  0x1d   :  { %1024 = vmatprep.mubr.msk.bf16.mxu0 %vm143_vm0, %v1117_v9  ;;  %v1432_v9 = vld [vmem:[%s1610_s4] ss:$0 sm:$0xff]  ;;  %s1276_s4 = smov 112  }
  0x24   :  { %1025 = vmatmul.mubr.msk.bf16.gmra.mrb[8].mxu0 %vm143_vm0, %v1118_v10 }
  0x25   :  { %1028 = vmatprep.mubr.msk.bf16.mxu0 %vm143_vm0, %v1119_v11 }
  0x2c   :  { %1029 = vmatmul.mubr.msk.bf16.gmra.mrb[12].mxu0 %vm143_vm0, %v1120_v12 }
  0x2d   :  { %1088 = vmatprep.mubr.msk.bf16.mxu0 %vm1277_vm2, %v1275_v15 }
  0xe7   :  { %v1018_v17 = vpop.f32.mrb[0].mxu0 }
  0xe8   :  { %v211_v18 = vadd.f32 %v1018_v17, %v1395_v16  ;;  %v202_v19 = vpop.f32.mrb[1].mxu0 }
  0xe9   :  { %v203_v20 = vadd.f32 %v1395_v16, %v202_v19  ;;  %v1019_v21 = vpop.f32.mrb[2].mxu0 }
  0xea   :  { %v214_v22 = vadd.f32 %v1019_v21, %v1395_v16  ;;  %v205_v23 = vpop.f32.mrb[3].mxu0  ;;  %v267_v25 = vmax.f32 %v211_v18, 0.0 }
  0xeb   :  { %v206_v24 = vadd.f32 %v1395_v16, %v205_v23  ;;  %v265_v27 = vmax.f32 %v203_v20, 0.0 }
  0xec   :  { %v268_v26 = vmax.f32 %v214_v22, 0.0 }
  0xed   :  { %v266_v28 = vmax.f32 %v206_v24, 0.0 }
  0xee   :  { %v282_v29 = vpack.c.bf16 %v268_v26, %v267_v25 }
  0xef   :  { %v1022_v30 = vpop.f32.mrb[4].mxu0  ;;  %v281_v31 = vpack.c.bf16 %v266_v28, %v265_v27 }
  0xf0   :  { %v227_v32 = vadd.f32 %v1022_v30, %v1395_v16  ;;  %v218_v33 = vpop.f32.mrb[5].mxu0 }
  0xf1   :  { %v219_v34 = vadd.f32 %v1395_v16, %v218_v33  ;;  %v1023_v35 = vpop.f32.mrb[6].mxu0  ;;  %1036 = vmatprep.mubr.msk.bf16.mxu1 %vm312_vm1, %v281_v31  ;;  %1073 = vmatpush3.bf16.msra.mxu0 %v281_v31 }
  0xf2   :  { %v271_v36 = vmax.f32 %v227_v32, 0.0  ;;  %v230_v37 = vadd.f32 %v1023_v35, %v1395_v16  ;;  %v221_v38 = vpop.f32.mrb[7].mxu0  ;;  %1037 = vmatmul.mubr.msk.bf16.vlgmr.msra.gmra.mrb[0].mxu1 %vm312_vm1, %v282_v29  ;;  %1074 = vmatprep.subr.bf16.mxu0 %v1275_v15 }
  0xf3   :  { %v269_v39 = vmax.f32 %v219_v34, 0.0  ;;  %v222_v40 = vadd.f32 %v1395_v16, %v221_v38 }
  0xf4   :  { %v272_v41 = vmax.f32 %v230_v37, 0.0 }
  0xf5   :  { %v270_v42 = vmax.f32 %v222_v40, 0.0  ;;  %1075 = vmatpush3.bf16.msra.mxu0 %v282_v29 }
  0xf6   :  { %v284_v43 = vpack.c.bf16 %v272_v41, %v271_v36  ;;  %1076 = vmatprep.subr.bf16.mxu0 %v1275_v15 }
  0xf7   :  { %v283_v44 = vpack.c.bf16 %v270_v42, %v269_v39  ;;  %v1026_v45 = vpop.f32.mrb[8].mxu0 }
  0xf8   :  { %v243_v46 = vadd.f32 %v1026_v45, %v1395_v16  ;;  %v234_v47 = vpop.f32.mrb[9].mxu0 }
  0xf9   :  { %v235_v48 = vadd.f32 %v1395_v16, %v234_v47  ;;  %v1027_v49 = vpop.f32.mrb[10].mxu0  ;;  %1040 = vmatprep.mubr.msk.bf16.mxu1 %vm312_vm1, %v283_v44  ;;  %1077 = vmatpush3.bf16.msra.mxu0 %v283_v44 }
  0xfa   :  { %v275_v50 = vmax.f32 %v243_v46, 0.0  ;;  %v246_v51 = vadd.f32 %v1027_v49, %v1395_v16  ;;  %v237_v52 = vpop.f32.mrb[11].mxu0  ;;  %1041 = vmatmul.mubr.msk.bf16.gmra.mrb[4].mxu1 %vm312_vm1, %v284_v43  ;;  %1078 = vmatprep.subr.bf16.mxu0 %v1275_v15 }
  0xfb   :  { %v273_v53 = vmax.f32 %v235_v48, 0.0  ;;  %v238_v54 = vadd.f32 %v1395_v16, %v237_v52 }
  0xfc   :  { %v276_v55 = vmax.f32 %v246_v51, 0.0 }
  0xfd   :  { %v274_v56 = vmax.f32 %v238_v54, 0.0  ;;  %1079 = vmatpush3.bf16.msra.mxu0 %v284_v43 }
  0xfe   :  { %v286_v57 = vpack.c.bf16 %v276_v55, %v275_v50  ;;  %1080 = vmatprep.subr.bf16.mxu0 %v1275_v15 }
  0xff   :  { %v285_v58 = vpack.c.bf16 %v274_v56, %v273_v53  ;;  %v1030_v59 = vpop.f32.mrb[12].mxu0 }
 0x100   :  { %v259_v60 = vadd.f32 %v1030_v59, %v1395_v16  ;;  %v250_v61 = vpop.f32.mrb[13].mxu0 }
 0x101   :  { %v251_v62 = vadd.f32 %v1395_v16, %v250_v61  ;;  %v1031_v63 = vpop.f32.mrb[14].mxu0  ;;  %1044 = vmatprep.mubr.msk.bf16.mxu1 %vm312_vm1, %v285_v58  ;;  %1081 = vmatpush3.bf16.msra.mxu0 %v285_v58 }
 0x102   :  { %v279_v0 = vmax.f32 %v259_v60, 0.0  ;;  %v262_v1 = vadd.f32 %v1031_v63, %v1395_v16  ;;  %v253_v2 = vpop.f32.mrb[15].mxu0  ;;  %1045 = vmatmul.mubr.msk.bf16.gmra.mrb[8].mxu1 %vm312_vm1, %v286_v57  ;;  %1082 = vmatprep.subr.bf16.mxu0 %v1275_v15 }
 0x103   :  { %v277_v3 = vmax.f32 %v251_v62, 0.0  ;;  %v254_v4 = vadd.f32 %v1395_v16, %v253_v2 }
 0x104   :  { %v280_v5 = vmax.f32 %v262_v1, 0.0 }
 0x105   :  { %v278_v6 = vmax.f32 %v254_v4, 0.0  ;;  %1083 = vmatpush3.bf16.msra.mxu0 %v286_v57 }
 0x106   :  { %v288_v7 = vpack.c.bf16 %v280_v5, %v279_v0  ;;  %1084 = vmatprep.subr.bf16.mxu0 %v1275_v15 }
 0x107   :  { %v287_v8 = vpack.c.bf16 %v278_v6, %v277_v3 }
 0x109   :  { %1048 = vmatprep.mubr.msk.bf16.mxu1 %vm312_vm1, %v287_v8  ;;  %1085 = vmatpush3.bf16.msra.mxu0 %v287_v8 }
 0x10a   :  { %1049 = vmatmul.mubr.msk.bf16.gmra.mrb[12].mxu1 %vm312_vm1, %v288_v7  ;;  %1086 = vmatprep.subr.bf16.mxu0 %v1275_v15 }
 0x10b   :  { %1068 = vmatprep.mubr.msk.bf16.mxu1 %vm1277_vm2, %v1275_v15 }
 0x10d   :  { %1087 = vmatpush3.bf16.msra.mxu0 %v288_v7 }
 0x10e   :  { %1092 = vmatprep.subr.bf16.mxu0 %v1275_v15 }
 0x1c5   :  { %v1038_v10 = vpop.f32.mrb[0].mxu1 }
 0x1c6   :  { %v1435_v11 = vadd.f32 %v1038_v10, %v1432_v9  ;;  %v371_v12 = vpop.f32.mrb[1].mxu1 }
 0x1c7   :  { %v1438_v13 = vadd.f32 %v1432_v9, %v371_v12  ;;  %v1039_v14 = vpop.f32.mrb[2].mxu1 }
 0x1c8   :  { %v947_v16 = vmul.f32 -1.442695, %v1435_v11  ;;  %v1442_v17 = vadd.f32 %v1039_v14, %v1432_v9  ;;  %v374_v18 = vpop.f32.mrb[3].mxu1 }
 0x1c9   :  { %v945_v19 = vmul.f32 -1.442695, %v1438_v13  ;;  %v1446_v20 = vadd.f32 %v1432_v9, %v374_v18 }
 0x1ca   :  { %1125 = vpow2.f32 %v947_v16  ;;  %v948_v21 = vmul.f32 -1.442695, %v1442_v17 }
 0x1cb   :  { %1127 = vpow2.f32 %v945_v19  ;;  %v946_v22 = vmul.f32 -1.442695, %v1446_v20 }
 0x1cc   :  { %1129 = vpow2.f32 %v948_v21 }
 0x1cd   :  { %v1042_v23 = vpop.f32.mrb[4].mxu1  ;;  %1131 = vpow2.f32 %v946_v22 }
 0x1ce   :  { %v1451_v24 = vadd.f32 %v1042_v23, %v1432_v9  ;;  %v387_v25 = vpop.f32.mrb[5].mxu1 }
 0x1cf   :  { %v1454_v26 = vadd.f32 %v1432_v9, %v387_v25  ;;  %v1043_v27 = vpop.f32.mrb[6].mxu1 }
 0x1d0   :  { %v951_v28 = vmul.f32 -1.442695, %v1451_v24  ;;  %v1458_v29 = vadd.f32 %v1043_v27, %v1432_v9  ;;  %v390_v30 = vpop.f32.mrb[7].mxu1 }
 0x1d1   :  { %v949_v31 = vmul.f32 -1.442695, %v1454_v26  ;;  %v1462_v32 = vadd.f32 %v1432_v9, %v390_v30 }
 0x1d2   :  { %1133 = vpow2.f32 %v951_v28  ;;  %v952_v33 = vmul.f32 -1.442695, %v1458_v29 }
 0x1d3   :  { %1135 = vpow2.f32 %v949_v31  ;;  %v950_v37 = vmul.f32 -1.442695, %v1462_v32 }
 0x1d4   :  { %v1126_v34 = vpop.eup %1125  ;;  %1137 = vpow2.f32 %v952_v33 }
 0x1d5   :  { %v1128_v35 = vpop.eup %1127  ;;  %v500_v36 = vadd.f32 1.0, %v1126_v34  ;;  %v1046_v38 = vpop.f32.mrb[8].mxu1 }
 0x1d6   :  { %v498_v39 = vadd.f32 1.0, %v1128_v35  ;;  %v1467_v40 = vadd.f32 %v1046_v38, %v1432_v9  ;;  %v403_v41 = vpop.f32.mrb[9].mxu1  ;;  %v1130_v42 = vpop.eup %1129 }
 0x1d7   :  { %1139 = vrcp.f32 %v500_v36  ;;  %v1047_v43 = vpop.f32.mrb[10].mxu1  ;;  %v501_v44 = vadd.f32 1.0, %v1130_v42  ;;  %v1132_v46 = vpop.eup %1131  ;;  %v1470_v47 = vadd.f32 %v1432_v9, %v403_v41 }
 0x1d8   :  { %1141 = vrcp.f32 %v498_v39  ;;  %v406_v45 = vpop.f32.mrb[11].mxu1  ;;  %v499_v48 = vadd.f32 1.0, %v1132_v46  ;;  %v955_v49 = vmul.f32 -1.442695, %v1467_v40  ;;  %v1475_v53 = vadd.f32 %v1047_v43, %v1432_v9 }
 0x1d9   :  { %1143 = vpow2.f32 %v950_v37  ;;  %v953_v52 = vmul.f32 -1.442695, %v1470_v47  ;;  %v1478_v58 = vadd.f32 %v1432_v9, %v406_v45 }
 0x1da   :  { %1145 = vrcp.f32 %v501_v44  ;;  %v956_v63 = vmul.f32 -1.442695, %v1475_v53 }
 0x1db   :  { %1147 = vrcp.f32 %v499_v48  ;;  %v954_v3 = vmul.f32 -1.442695, %v1478_v58 }
 0x1dc   :  { %v1134_v50 = vpop.eup %1133  ;;  %1149 = vpow2.f32 %v955_v49 }
 0x1dd   :  { %v1136_v51 = vpop.eup %1135  ;;  %v1050_v54 = vpop.f32.mrb[12].mxu1  ;;  %v504_v55 = vadd.f32 1.0, %v1134_v50 }
 0x1de   :  { %v502_v56 = vadd.f32 1.0, %v1136_v51  ;;  %v419_v57 = vpop.f32.mrb[13].mxu1  ;;  %v1138_v60 = vpop.eup %1137  ;;  %v1482_v1 = vadd.f32 %v1050_v54, %v1432_v9 }
 0x1df   :  { %v1051_v59 = vpop.f32.mrb[14].mxu1  ;;  %v505_v4 = vadd.f32 1.0, %v1138_v60  ;;  %v1488_v6 = vadd.f32 %v1432_v9, %v419_v57 }
 0x1e0   :  { %1151 = vrcp.f32 %v502_v56  ;;  %v422_v61 = vpop.f32.mrb[15].mxu1  ;;  %v959_v10 = vmul.f32 -1.442695, %v1482_v1  ;;  %v1495_v16 = vadd.f32 %v1051_v59, %v1432_v9  ;;  %v1278_v56 = vmov 0  }
 0x1e1   :  { %v1140_v62 = vpop.eup %1139  ;;  %1153 = vpow2.f32 %v953_v52  ;;  %v957_v14 = vmul.f32 -1.442695, %v1488_v6  ;;  %v1498_v19 = vadd.f32 %v1432_v9, %v422_v61  ;;  %1107 = vset.pattern.permute.xlu0 %v1278_v56  ;;  %1108 = vset.pattern.permute.xlu1 %v1278_v56 }
 0x1e2   :  { %v1142_v0 = vpop.eup %1141  ;;  %1155 = vrcp.f32 %v504_v55  ;;  %566 = vrot.lane.b32.xlu1 %v1140_v62, %s1276_s4  ;;  %v960_v27 = vmul.f32 -1.442695, %v1495_v16  ;;  %v635_v55 = vld [vmem:[#allocation5] sm:$0x1] }
 0x1e3   :  { %v1144_v2 = vpop.eup %1143  ;;  %562 = vrot.lane.b32.xlu0 %v1142_v0, %s1276_s4  ;;  %1157 = vpow2.f32 %v956_v63  ;;  %v958_v28 = vmul.f32 -1.442695, %v1498_v19 }
 0x1e4   :  { %v503_v5 = vadd.f32 1.0, %v1144_v2  ;;  %v1146_v7 = vpop.eup %1145 }
 0x1e5   :  { %v1148_v8 = vpop.eup %1147 }
 0x1e6   :  { %1159 = vrcp.f32 %v503_v5  ;;  %568 = vrot.lane.b32.xlu1 %v1146_v7, %s1276_s4  ;;  %v1150_v12 = vpop.eup %1149 }
 0x1e7   :  { %1161 = vpow2.f32 %v954_v3  ;;  %564 = vrot.lane.b32.xlu0 %v1148_v8, %s1276_s4  ;;  %v508_v22 = vadd.f32 1.0, %v1150_v12 }
 0x1e8   :  { %1163 = vrcp.f32 %v505_v4 }
 0x1e9   :  { %1165 = vpow2.f32 %v959_v10 }
 0x1ea   :  { %v1152_v18 = vpop.eup %1151  ;;  %1167 = vpow2.f32 %v957_v14 }
 0x1eb   :  { %v1154_v21 = vpop.eup %1153  ;;  %570 = vrot.lane.b32.xlu0 %v1152_v18, %s1276_s4 }
 0x1ec   :  { %v1156_v23 = vpop.eup %1155  ;;  %v506_v25 = vadd.f32 1.0, %v1154_v21 }
 0x1ed   :  { %v1158_v30 = vpop.eup %1157 }
 0x1ee   :  { %1169 = vrcp.f32 %v506_v25  ;;  %v509_v34 = vadd.f32 1.0, %v1158_v30 }
 0x1ef   :  { %1171 = vrcp.f32 %v508_v22  ;;  %574 = vrot.lane.b32.xlu0 %v1156_v23, %s1276_s4 }
 0x1f0   :  { %v1160_v31 = vpop.eup %1159  ;;  %1173 = vpow2.f32 %v960_v27 }
 0x1f1   :  { %v1162_v9 = vpop.eup %1161  ;;  %572 = vrot.lane.b32.xlu1 %v1160_v31, %s1276_s4  ;;  %1175 = vpow2.f32 %v958_v28 }
 0x1f2   :  { %v1164_v33 = vpop.eup %1163  ;;  %v507_v35 = vadd.f32 1.0, %v1162_v9 }
 0x1f3   :  { %v1166_v36 = vpop.eup %1165 }
 0x1f4   :  { %1177 = vrcp.f32 %v507_v35  ;;  %v1168_v37 = vpop.eup %1167  ;;  %v512_v38 = vadd.f32 1.0, %v1166_v36 }
 0x1f5   :  { %576 = vrot.lane.b32.xlu1 %v1164_v33, %s1276_s4  ;;  %1179 = vrcp.f32 %v509_v34  ;;  %v510_v39 = vadd.f32 1.0, %v1168_v37 }
 0x1f7   :  { %1181 = vrcp.f32 %v510_v39 }
 0x1f8   :  { %v1170_v41 = vpop.eup %1169  ;;  %1183 = vrcp.f32 %v512_v38 }
 0x1f9   :  { %v1172_v42 = vpop.eup %1171  ;;  %578 = vrot.lane.b32.xlu0 %v1170_v41, %s1276_s4 }
 0x1fa   :  { %v1174_v43 = vpop.eup %1173 }
 0x1fb   :  { %v1176_v44 = vpop.eup %1175  ;;  %v513_v45 = vadd.f32 1.0, %v1174_v43 }
 0x1fc   :  { %v511_v46 = vadd.f32 1.0, %v1176_v44 }
 0x1fd   :  { %582 = vrot.lane.b32.xlu0 %v1172_v42, %s1276_s4 }
 0x1fe   :  { %v1178_v48 = vpop.eup %1177  ;;  %1185 = vrcp.f32 %v511_v46 }
 0x1ff   :  { %580 = vrot.lane.b32.xlu1 %v1178_v48, %s1276_s4  ;;  %v1180_v49 = vpop.eup %1179  ;;  %1187 = vrcp.f32 %v513_v45 }
 0x200   :  { %1189 = vtanh.f32 %v1435_v11 }
 0x201   :  { %v1182_v50 = vpop.eup %1181  ;;  %1191 = vtanh.f32 %v1438_v13 }
 0x202   :  { %586 = vrot.lane.b32.xlu0 %v1182_v50, %s1276_s4  ;;  %v1184_v51 = vpop.eup %1183  ;;  %1193 = vtanh.f32 %v1442_v17 }
 0x203   :  { %584 = vrot.lane.b32.xlu1 %v1180_v49, %s1276_s4  ;;  %1195 = vtanh.f32 %v1446_v20 }
 0x204   :  { %1197 = vtanh.f32 %v1454_v26 }
 0x205   :  { %1199 = vtanh.f32 %v1462_v32 }
 0x206   :  { %590 = vrot.lane.b32.xlu0 %v1184_v51, %s1276_s4  ;;  %1201 = vtanh.f32 %v1451_v24 }
 0x207   :  { %1203 = vtanh.f32 %v1458_v29 }
 0x208   :  { %v1186_v52 = vpop.eup %1185  ;;  %1205 = vtanh.f32 %v1470_v47 }
 0x209   :  { %588 = vrot.lane.b32.xlu1 %v1186_v52, %s1276_s4  ;;  %v1188_v54 = vpop.eup %1187  ;;  %1207 = vtanh.f32 %v1478_v58 }
 0x20a   :  { %638 = vperm.xlu0 %1107, %v635_v55   ;;  %v1190_v60 = vpop.eup %1189  ;;  %1209 = vtanh.f32 %v1467_v40 }
 0x20b   :  { %v1192_v61 = vpop.eup %1191  ;;  %1211 = vtanh.f32 %v1475_v53 }
 0x20c   :  { %v1194_v62 = vpop.eup %1193  ;;  %1213 = vtanh.f32 %v1488_v6 }
 0x20d   :  { %592 = vrot.lane.b32.xlu1 %v1188_v54, %s1276_s4  ;;  %v1196_v0 = vpop.eup %1195  ;;  %1215 = vtanh.f32 %v1498_v19 }
 0x20e   :  { %v1198_v26 = vpop.eup %1197  ;;  %1217 = vtanh.f32 %v1482_v1 }
 0x20f   :  { %v1200_v32 = vpop.eup %1199  ;;  %1219 = vtanh.f32 %v1495_v16 }
 0x210   :  { %v1202_v18 = vpop.eup %1201 }
 0x211   :  { %v1204_v22 = vpop.eup %1203 }
 0x212   :  { %v1206_v30 = vpop.eup %1205 }
 0x213   :  { %v1208_v31 = vpop.eup %1207 }
 0x214   :  { %v1210_v40 = vpop.eup %1209 }
 0x215   :  { %v1212_v36 = vpop.eup %1211 }
 0x216   :  { %v1214_v19 = vpop.eup %1213 }
 0x217   :  { %v1216_v42 = vpop.eup %1215 }
 0x218   :  { %v1218_v48 = vpop.eup %1217 }
 0x219   :  { %v1220_v16 = vpop.eup %1219 }
 0x254   :  { %v567_v57 = vpop.permute.xlu1 %566 }
 0x255   :  { %v563_v59 = vpop.permute.xlu0 %562  ;;  %v612_v2 = vmul.f32 %v1190_v60, %v567_v57  ;;  %v641_v60 = vlaneseq }
 0x256   :  { %v610_v4 = vmul.f32 %v1192_v61, %v563_v59  ;;  %v634_v59 = vld [vmem:[%s1611_s5] sm:$0x1] }
 0x257   :  { %v642_v61 = vshrl.u32 %v641_v60, 7 }
 0x258   :  { %v569_v63 = vpop.permute.xlu1 %568 }
 0x259   :  { %v613_v3 = vmul.f32 %v1194_v62, %v569_v63  ;;  %v565_v11 = vpop.permute.xlu0 %564  ;;  %v1553_v62 = vsub.s32 0, %v642_v61 }
 0x25a   :  { %v611_v13 = vmul.f32 %v1196_v0, %v565_v11  ;;  %v715_v0 = vand.u32 127, %v641_v60 }
 0x25b   :  { %v627_v5 = vpack.c.bf16 %v613_v3, %v612_v2 }
 0x25c   :  { %v626_v17 = vpack.c.bf16 %v611_v13, %v610_v4  ;;  %vm719_vm4 = vcmp.lt.s32.totalorder %v715_v0, 16 }
 0x25d   :  { %v571_v7 = vpop.permute.xlu0 %570  ;;  %v653_v24 = vsel %vm645_vm3, %v627_v5, 0 }
 0x25e   :  { %v650_v20 = vsel %vm645_vm3, %v626_v17, 0  ;;  %v614_v10 = vmul.f32 %v1198_v26, %v571_v7  ;;  %v1279_v7 = vmov -inf  }
 0x25f   :  { %1053 = vmatpush3.bf16.xpose.msra.mxu1 %v650_v20  ;;  %44 = vst.msk [vmem:[#allocation2] sm:$0x1] %vm43_vm6, %v1279_v7 }
 0x260   :  { %1054 = vmatprep.subr.bf16.mxu1 %v1275_v15 }
 0x261   :  { %v575_v14 = vpop.permute.xlu0 %574 }
 0x262   :  { %v616_v23 = vmul.f32 %v1202_v18, %v575_v14 }
 0x263   :  { %v573_v8 = vpop.permute.xlu1 %572 }
 0x264   :  { %v615_v12 = vmul.f32 %v1200_v32, %v573_v8 }
 0x266   :  { %v628_v21 = vpack.c.bf16 %v615_v12, %v614_v10  ;;  %v721_v26 = vld [vmem:[#allocation2] sm:$0x1] }
 0x267   :  { %v577_v29 = vpop.permute.xlu1 %576  ;;  %1055 = vmatpush3.bf16.xpose.msra.mxu1 %v653_v24 }
 0x268   :  { %v617_v25 = vmul.f32 %v1204_v22, %v577_v29  ;;  %1056 = vmatprep.subr.bf16.mxu1 %v1275_v15  ;;  %v656_v47 = vsel %vm645_vm3, %v628_v21, 0 }
 0x26a   :  { %v629_v27 = vpack.c.bf16 %v617_v25, %v616_v23 }
 0x26b   :  { %v579_v28 = vpop.permute.xlu0 %578 }
 0x26c   :  { %v618_v9 = vmul.f32 %v1206_v30, %v579_v28  ;;  %v659_v39 = vsel %vm645_vm3, %v629_v27, 0  ;;  %v742_v27 = vld [vmem:[#allocation3] sm:$0x1] }
 0x26f   :  { %1057 = vmatpush3.bf16.xpose.msra.mxu1 %v656_v47  ;;  %v583_v34 = vpop.permute.xlu0 %582 }
 0x270   :  { %1058 = vmatprep.subr.bf16.mxu1 %v1275_v15  ;;  %v620_v37 = vmul.f32 %v1210_v40, %v583_v34  ;;  %v750_v40 = vld [vmem:[#allocation4] sm:$0x1] }
 0x271   :  { %v581_v58 = vpop.permute.xlu1 %580 }
 0x272   :  { %v619_v33 = vmul.f32 %v1208_v31, %v581_v58  ;;  %v1123_v58 = vld [vmem:[%s1613_s7] sm:$0xff]  }
 0x274   :  { %v630_v35 = vpack.c.bf16 %v619_v33, %v618_v9  ;;  %v587_v41 = vpop.permute.xlu0 %586  ;;  %v1124_v9 = vld [vmem:[%s1613_s7 + $0x8] sm:$0xff]   ;;  %s1280_s7 = smov [#allocation8]  }
 0x275   :  { %v585_v53 = vpop.permute.xlu1 %584  ;;  %v622_v44 = vmul.f32 %v1214_v19, %v587_v41  ;;  %s901_s26 = sshll.u32 %s1280_s7, 4  ;;  %s902_s26 = int_to_ptr.vmem [resolvable:$true] %s901_s26 }
 0x276   :  { %v621_v38 = vmul.f32 %v1212_v36, %v585_v53  ;;  %v662_v1 = vsel %vm645_vm3, %v630_v35, 0  ;;  %s1227_s27 = scalar_lea.vmem %s902_s26, 16  ;;  %s1231_s28 = scalar_lea.vmem %s902_s26, 32 }
 0x277   :  { %1059 = vmatpush3.bf16.xpose.msra.mxu1 %v659_v39  ;;  %p1228_p0 = scmp.ne.s32.totalorder %s902_s26, %s1227_s27  ;;  %p1232_p1 = scmp.lt.s32.totalorder %s902_s26, %s902_s26 }
 0x278   :  { %v631_v6 = vpack.c.bf16 %v621_v38, %v620_v37  ;;  %1060 = vmatprep.subr.bf16.mxu1 %v1275_v15  ;;  %v591_v46 = vpop.permute.xlu0 %590  ;;  %p1233_p2 = scmp.lt.s32.totalorder %s1231_s28, %s1227_s27 }
 0x279   :  { %v624_v51 = vmul.f32 %v1218_v48, %v591_v46 }
 0x27a   :  { %v665_v55 = vsel %vm645_vm3, %v631_v6, 0  ;;  %p1234_p3 = por %p1233_p2, %p1232_p1 }
 0x27b   :  { %v589_v43 = vpop.permute.xlu1 %588 }
 0x27c   :  { %v623_v45 = vmul.f32 %v1216_v42, %v589_v43  ;;  %p1235_p4 = pnand %p1234_p3, %p1228_p0 }
 0x27e   :  { %v632_v49 = vpack.c.bf16 %v623_v45, %v622_v44 }
 0x27f   :  { %1061 = vmatpush3.bf16.xpose.msra.mxu1 %v662_v1  ;;  %v593_v50 = vpop.permute.xlu1 %592 }
 0x280   :  { %1062 = vmatprep.subr.bf16.mxu1 %v1275_v15  ;;  %v625_v52 = vmul.f32 %v1220_v16, %v593_v50  ;;  %v668_v56 = vsel %vm645_vm3, %v632_v49, 0 }
 0x282   :  { %v633_v54 = vpack.c.bf16 %v625_v52, %v624_v51 }
 0x284   :  { %v671_v57 = vsel %vm645_vm3, %v633_v54, 0 }
 0x287   :  { %1063 = vmatpush3.bf16.xpose.msra.mxu1 %v665_v55 }
 0x288   :  { %1064 = vmatprep.subr.bf16.mxu1 %v1275_v15 }
 0x289   :  { %v639_v63 = vpop.permute.xlu0 %638 }
 0x28a   :  { %v644_v2 = vrot.slane %v639_v63, %v1553_v62 }
 0x28f   :  { %1065 = vmatpush3.bf16.xpose.msra.mxu1 %v668_v56 }
 0x290   :  { %1066 = vmatprep.subr.bf16.mxu1 %v1275_v15 }
 0x297   :  { %1067 = vmatpush3.bf16.xpose.msra.mxu1 %v671_v57 }
 0x29e   :  { %1069 = vmatmul.mubr.msk.bf16.vlgmr.msra.gmra.mrb[16].mxu1 %vm645_vm3, %v634_v59 }
 0x371   :  { %v707_v3 = vpop.f32.mrb[16].mxu1 }
 0x372   :  { %v708_v11 = vadd.f32 %v707_v3, %v644_v2  ;;  %v1070_v4 = vpop.f32.mrb[17].mxu1 }
 0x373   :  { %v710_v13 = vpop.f32.mrb[18].mxu1 }
 0x374   :  { %713 = vst [vmem:[#allocation8] sm:$0x1] %v708_v11  ;;  %v1071_v5 = vpop.f32.mrb[19].mxu1  ;;  %v720_v17 = vsel %vm719_vm4, %v708_v11, -inf }
 0x375   :  { %v723_v20 = vsel %vm722_vm5, %v720_v17, -inf }
 0x376   :  { %724 = vmax.xlane.f32.xlu1 %v723_v20 }
 0x403   :  { %v725_v32 = vpop.xlane.xlu1 %724 }
 0x404   :  { %v726_v8 = vmax.f32 %v721_v26, %v725_v32 }
 0x406   :  { %v727_v10 = vsub.f32 %v721_v26, %v726_v8  ;;  %805 = vst.msk [vmem:[#allocation2] sm:$0x1] %vm43_vm6, %v726_v8  ;;  %732 = vperm.xlu0 %1107, %v726_v8  }
 0x408   :  { %v728_v12 = vmul.f32 1.442695, %v727_v10 }
 0x40a   :  { %1221 = vpow2.f32 %v728_v12 }
 0x414   :  { %v1222_v14 = vpop.eup %1221 }
 0x415   :  { %753 = vperm.xlu1 %1108, %v1222_v14   ;;  %v743_v28 = vmul.f32 %v1222_v14, %v742_v27 }
 0x485   :  { %v733_v18 = vpop.permute.xlu0 %732 }
 0x486   :  { %v738_v21 = vrot.slane %v733_v18, %v1553_v62 }
 0x488   :  { %v739_v24 = vsub.f32 %v720_v17, %v738_v21 }
 0x48a   :  { %v740_v22 = vmul.f32 1.442695, %v739_v24 }
 0x48c   :  { %1223 = vpow2.f32 %v740_v22 }
 0x494   :  { %v754_v33 = vpop.permute.xlu1 %753 }
 0x495   :  { %v759_v34 = vrot.slane %v754_v33, %v1553_v62 }
 0x496   :  { %v1224_v29 = vpop.eup %1223 }
 0x497   :  { %v744_v23 = vsel %vm722_vm5, %v1224_v29, 0.0  ;;  %v761_v25 = vpack.c.bf16 %v1224_v29, %v1224_v29  ;;  %v760_v35 = vmul.f32 %v759_v34, %v750_v40 }
 0x498   :  { %745 = vadd.xlane.f32.xlu0 %v744_v23 }
 0x499   :  { %1089 = vmatmul.mubr.bf16.vlgmr.msra.gmra.mrb[16].mxu0 %v761_v25 }
 0x49a   :  { %1096 = vmatprep.mubr.msk.bf16.mxu0 %vm1277_vm2, %v1275_v15  ;;  %1093 = vmatpush3.bf16.msra.mxu0 %v1123_v58 }
 0x49b   :  { %1094 = vmatprep.subr.bf16.mxu0 %v1275_v15 }
 0x49e   :  { %1095 = vmatpush3.bf16.msra.mxu0 %v1124_v9 }
 0x525   :  { %v746_v47 = vpop.xlane.xlu0 %745 }
 0x526   :  { %v747_v30 = vadd.f32 %v746_v47, %v743_v28 }
 0x528   :  { %749 = vst.msk [vmem:[#allocation3] sm:$0x1] %vm43_vm6, %v747_v30 }
 0x52f   :  { %v810_v31 = vld [vmem:[#allocation3] sm:$0x1] }
 0x530   :  { %813 = vperm.xlu0 %1107, %v810_v31  }
 0x56c   :  { %v796_v36 = vpop.f32.mrb[16].mxu0 }
 0x56d   :  { %v802_v53 = vadd.f32 %v796_v36, %v760_v35  ;;  %v1090_v37 = vpop.f32.mrb[17].mxu0 }
 0x56e   :  { %v799_v38 = vpop.f32.mrb[18].mxu0 }
 0x56f   :  { %804 = vst.msk [vmem:[#allocation4] sm:$0x1] %vm46_vm7, %v802_v53  ;;  %v1091_v39 = vpop.f32.mrb[19].mxu0 }
 0x576   :  { %v809_v42 = vld [vmem:[#allocation4] sm:$0x1] }
 0x5af   :  { %v814_v6 = vpop.permute.xlu0 %813 }
 0x5b0   :  { %v819_v41 = vrot.slane %v814_v6, %v1553_v62 }
 0x5b2   :  { %1225 = vrcp.f32 %v819_v41 }
 0x5bc   :  { %v1226_v19 = vpop.eup %1225 }
 0x5bd   :  { %v821_v15 = vmul.f32 %v1226_v19, %v809_v42 }
 0x5bf   :  { %v822_v43 = vpack.c.bf16 %v821_v15, %v821_v15 }
 0x5c1   :  { %1097 = vmatmul.mubr.msk.bf16.vlgmr.msra.gmra.mrb[20].mxu0 %vm312_vm1, %v822_v43 }
 0x5c2   :  { %1238 = shalt.err (!%p1235_p4)
}
 0x5c3   :  { %s1239_s30 = scalar_lea.hbm %s1616_s10, 16 }
 0x5c4   :  { %p1240_p5 = scmp.ne.s32.totalorder %s1616_s10, %s1239_s30  ;;  %p1243_p6 = scmp.lt.u32.totalorder %s1239_s30, %s1616_s10 }
 0x5c6   :  { %p1245_p7 = pnand %p1243_p6, %p1240_p5 }
 0x5c8   :  { %1248 = shalt.err (!%p1245_p7)
}
 0x5c9   :  { %904 = dma.vmem_to_hbm [thread:$0]  %s902_s26, 16, %s1616_s10, [#allocation9]   ;;  %v827_v44 = vld [vmem:[%s1614_s8] sm:$0x1]  ;;  %vm883_vm8 = vcmask 8192  }
 0x5ca   :  { %s1281_s19 = smov [#allocation6]  }
 0x5cb   :  { %s891_s20 = sshll.u32 %s1281_s19, 4  ;;  %s892_s20 = int_to_ptr.vmem [resolvable:$true] %s891_s20 }
 0x5cc   :  { %s1249_s0 = scalar_lea.vmem %s892_s20, 16  ;;  %s1253_s21 = scalar_lea.vmem %s892_s20, 32 }
 0x5cd   :  { %p1250_p8 = scmp.ne.s32.totalorder %s892_s20, %s1249_s0  ;;  %p1254_p9 = scmp.lt.s32.totalorder %s892_s20, %s892_s20 }
 0x5ce   :  { %p1255_p10 = scmp.lt.s32.totalorder %s1253_s21, %s1249_s0 }
 0x5d0   :  { %p1256_p11 = por %p1255_p10, %p1254_p9 }
 0x5d2   :  { %p1257_p12 = pnand %p1256_p11, %p1250_p8 }
 0x694   :  { %v877_v45 = vpop.f32.mrb[20].mxu0 }
 0x695   :  { %v878_v46 = vadd.f32 %v877_v45, %v827_v44  ;;  %v1098_v1 = vpop.f32.mrb[21].mxu0 }
 0x696   :  { %v880_v48 = vpop.f32.mrb[22].mxu0 }
 0x697   :  { %v1099_v49 = vpop.f32.mrb[23].mxu0  ;;  %884 = vst.msk [vmem:[#allocation6] sm:$0x1] %vm883_vm8, %v878_v46 }
 0x698   :  { %1260 = shalt.err (!%p1257_p12)
}
 0x699   :  { %s1261_s2 = scalar_lea.hbm %s1615_s9, 16 }
 0x69a   :  { %p1262_p13 = scmp.ne.s32.totalorder %s1615_s9, %s1261_s2  ;;  %p1265_p0 = scmp.lt.u32.totalorder %s1261_s2, %s1615_s9 }
 0x69c   :  { %p1267_p1 = pnand %p1265_p0, %p1262_p13 }
 0x69e   :  { %1270 = shalt.err (!%p1267_p1)
}
 0x69f   :  { %894 = dma.vmem_to_hbm [thread:$0]  %s892_s20, 16, %s1615_s9, [#allocation7]  }
 0x6a0   :  { %1271 = dma.done.wait [#allocation7], 16  }
 0x6a1   :  { %1272 = vsyncadd [#allocation7], 4294967280 }
 0x6a2   :  { %1273 = dma.done.wait [#allocation9], 16  }
 0x6a3   :  { %1274 = vsyncadd [#allocation9], 4294967280 }
 0x6a4   :  { %911 = vsyncpa [#allocation7], 1 }
 0x6a5   :  { %912 = vsyncpa [#allocation9], 1 }

</bundles_post_ra>
